<compile_context>
chip_gen: v6e
topology: v6e:2x2x1
jax: 0.10.0
libtpu: 0.0.40
codegen_flags: <defaults>
</compile_context>

<pallas_src>
import functools

import jax
import jax.numpy as jnp
from jax.experimental import pallas as pl
from jax.experimental.pallas import tpu as pltpu


def _round_up(x, m):
    return ((x + m - 1) // m) * m


# --------------------------------------------------------------------------- #
# Fused kernel: both ChebConv layers + ReLU, grid-less, fully VMEM resident.
# --------------------------------------------------------------------------- #
def _chebnet_fused_kernel(t_ref, x_ref, w1_ref, b1_ref, w2_ref, b2_ref, o_ref,
                          *, n_orders):
    """
    t_ref  : [N, K*N]      hstack_k T_k(L)                       (compute dtype)
    x_ref  : [N, B*C]      features, batch folded into lanes     (compute dtype)
    w1_ref : [K*B*C, BHp]  vstack_k kron(I_B, W1_k), cols zero-padded to BHp
    b1_ref : [1, BHp]      f32, zero-padded
    w2_ref : [K*BHp, BDp]  vstack_k kron(I_B, W2_k), rows->BHp, cols->BDp (zeros)
    b2_ref : [1, BDp]      f32, zero-padded
    o_ref  : [N, BDp]      f32, lane-dense output
    """
    f32 = jnp.float32
    cd = t_ref.dtype                       # MXU compute dtype (bf16 or f32)
    t_cat = t_ref[...]                     # [N, K*N]
    x = x_ref[...]                         # [N, B*C]
    bc = x_ref.shape[1]                    # B*C  (per-order layer-1 input width)
    bhp = w1_ref.shape[1]                  # BHp  (padded layer-1 output width)

    # ----- layer 1:  H1 = relu( T_cat @ vstack_k(X @ W1_k) + b1 ) ------------
    # K small weight dots restacked along rows -> one deep (K*N) MXU contraction;
    # the K-sum lands in the MXU accumulator instead of K-1 VALU adds.
    z1 = jnp.concatenate(
        [jnp.dot(x, w1_ref[k * bc:(k + 1) * bc, :], preferred_element_type=f32)
         for k in range(n_orders)], axis=0).astype(cd)            # [K*N, BHp]
    acc1 = jnp.dot(t_cat, z1, preferred_element_type=f32)         # [N, BHp] f32
    h1 = jnp.maximum(acc1 + b1_ref[...], 0.0).astype(cd)          # [N, BHp]

    # ----- layer 2:  OUT = relu( T_cat @ vstack_k(H1 @ W2_k) + b2 ) ----------
    z2 = jnp.concatenate(
        [jnp.dot(h1, w2_ref[k * bhp:(k + 1) * bhp, :], preferred_element_type=f32)
         for k in range(n_orders)], axis=0).astype(cd)            # [K*N, BDp]
    acc2 = jnp.dot(t_cat, z2, preferred_element_type=f32)         # [N, BDp] f32
    o_ref[...] = jnp.maximum(acc2 + b2_ref[...], 0.0)             # lane-dense store


# --------------------------------------------------------------------------- #
# One-time glue (hoisted): Laplacian, Chebyshev stack, block-diag weights.
# --------------------------------------------------------------------------- #
def _laplacian_cheb_polys(graph, n_orders):
    """Normalized Laplacian L = I - D^{-1/2} A D^{-1/2} and its Chebyshev polys."""
    N = graph.shape[0]
    d = jnp.sum(graph, axis=-1)
    # NOTE: guarded for isolated nodes (the PyTorch reference would produce inf
    # there); identical to the reference whenever all degrees are > 0.
    d_inv_sqrt = jnp.where(d > 0.0, 1.0 / jnp.sqrt(jnp.maximum(d, 1e-12)), 0.0)
    L = jnp.eye(N, dtype=jnp.float32) - (d_inv_sqrt[:, None] * graph) * d_inv_sqrt[None, :]
    polys = [jnp.eye(N, dtype=jnp.float32)]
    if n_orders > 1:
        polys.append(L)
    for _ in range(2, n_orders):
        polys.append(2.0 * (L @ polys[-1]) - polys[-2])
    return polys


def make_chebnet_forward(params, graph, *, batch_size, use_bf16=True):
    """Prepare all fixed operands once; return a jitted per-call forward."""
    f32 = jnp.float32
    cd = jnp.bfloat16 if use_bf16 else f32

    graph = jnp.asarray(graph, f32)
    w1 = jnp.asarray(params["w1"], f32)           # [K, C, H]   (K = Cheb orders)
    b1 = jnp.asarray(params["b1"], f32)           # [H]
    w2 = jnp.asarray(params["w2"], f32)           # [K, H, D]
    b2 = jnp.asarray(params["b2"], f32)           # [D]

    K, C, H = w1.shape
    D = w2.shape[-1]
    B = int(batch_size)
    N = graph.shape[0]

    BC, BH, BD = B * C, B * H, B * D
    BHp = max(128, _round_up(BH, 128))            # lane-dense hidden width
    BDp = max(128, _round_up(BD, 128))            # lane-dense output width

    # Chebyshev polynomial stack, hstacked over k for a single deep contraction.
    t_cat = jnp.concatenate(_laplacian_cheb_polys(graph, K), axis=1)     # [N, K*N]

    eyeB = jnp.eye(B, dtype=f32)
    # layer-1 weights: vstack_k kron(I_B, W1_k), columns zero-padded to BHp
    w1_all = jnp.concatenate(
        [jnp.pad(jnp.kron(eyeB, w1[k]), ((0, 0), (0, BHp - BH))) for k in range(K)],
        axis=0)                                                          # [K*BC, BHp]
    b1_all = jnp.pad(jnp.tile(b1, B), (0, BHp - BH)).reshape(1, BHp)
    # layer-2 weights: rows padded BH->BHp, columns padded BD->BDp (all zeros)
    w2_all = jnp.concatenate(
        [jnp.pad(jnp.kron(eyeB, w2[k]), ((0, BHp - BH), (0, BDp - BD))) for k in range(K)],
        axis=0)                                                          # [K*BHp, BDp]
    b2_all = jnp.pad(jnp.tile(b2, B), (0, BDp - BD)).reshape(1, BDp)

    t_cat_c = t_cat.astype(cd)
    w1_c = w1_all.astype(cd)
    w2_c = w2_all.astype(cd)

    # VMEM budget for the grid-less call (inputs + output + intermediates).
    cdb = 2 if use_bf16 else 4
    resident = (t_cat.size * cdb + N * BC * cdb
                + w1_all.size * cdb + w2_all.size * cdb
                + (BHp + BDp) * 4 + N * BDp * 4            # biases + output
                + K * N * (BHp + BDp) * cdb                # z1 / z2
                + N * (BHp + BDp) * 4)                     # f32 accumulators / h1
    vmem_limit = int(min(100 * 2 ** 20, max(8 * 2 ** 20, 2 * resident)))

    kernel = pl.pallas_call(
        functools.partial(_chebnet_fused_kernel, n_orders=K),
        out_shape=jax.ShapeDtypeStruct((N, BDp), f32),
        in_specs=[pl.BlockSpec(memory_space=pltpu.MemorySpace.VMEM)] * 6,
        out_specs=pl.BlockSpec(memory_space=pltpu.MemorySpace.VMEM),
        compiler_params=pltpu.CompilerParams(vmem_limit_bytes=vmem_limit),
    )

    @jax.jit
    def forward(flow_x):
        # per-call work: relayout X (batch folded into lanes), one kernel launch,
        # slice off the lane padding.
        x = flow_x.astype(f32).reshape(B, N, -1)                         # [B, N, C]
        x_all = jnp.transpose(x, (1, 0, 2)).reshape(N, BC).astype(cd)    # [N, B*C]
        out_pad = kernel(t_cat_c, x_all, w1_c, b1_all, w2_c, b2_all)     # [N, BDp]
        out = out_pad[:, :BD].reshape(N, B, D).transpose(1, 0, 2)        # [B, N, D]
        # torch.squeeze(output_2.unsqueeze(2))  (drops any size-1 dims)
        return jnp.squeeze(out[:, :, None, :])

    return forward


def chebnet_forward(params, flow_x, graph, *, use_bf16=True):
    """One-shot convenience wrapper (prepares + applies; prefer make_chebnet_forward)."""
    fwd = make_chebnet_forward(params, graph, batch_size=flow_x.shape[0],
                               use_bf16=use_bf16)
    return fwd(flow_x)


# --------------------------------------------------------------------------- #
# Pure-JAX reference (mirrors the PyTorch module) and parameter init.
# --------------------------------------------------------------------------- #
def chebnet_reference(params, flow_x, graph):
    f32 = jnp.float32
    hi = jax.lax.Precision.HIGHEST
    w1 = params["w1"].astype(f32); b1 = params["b1"].astype(f32)
    w2 = params["w2"].astype(f32); b2 = params["b2"].astype(f32)
    n_orders = w1.shape[0]
    T = jnp.stack(_laplacian_cheb_polys(graph.astype(f32), n_orders))    # [K, N, N]
    x = flow_x.astype(f32).reshape(flow_x.shape[0], flow_x.shape[1], -1)

    def conv(h, w, b):
        tx = jnp.einsum('knm,bmc->kbnc', T, h, precision=hi)
        return jnp.einsum('kbnc,kcd->bnd', tx, w, precision=hi) + b

    h1 = jax.nn.relu(conv(x, w1, b1))
    out = jax.nn.relu(conv(h1, w2, b2))
    return jnp.squeeze(out[:, :, None, :])


def init_chebnet_params(key, in_c, hid_c, out_c, K=1):
    """Deterministic xavier-normal weights matching the nn.Parameter shapes.
    Note: returns K+1 Chebyshev orders (the module's self.K = K + 1)."""
    def xavier(k, K_order, cin, cout):
        # xavier_normal_ on a (K+1, 1, cin, cout) tensor:
        fan_in = 1 * cin * cout
        fan_out = (K_order + 1) * cin * cout
        std = (2.0 / (fan_in + fan_out)) ** 0.5
        w = std * jax.random.normal(k, (K_order + 1, 1, cin, cout), dtype=jnp.float32)
        return w[:, 0, :, :]                                             # [K+1, cin, cout]

    k1, k2 = jax.random.split(key)
    return {
        "w1": xavier(k1, K, in_c, hid_c),
        "b1": jnp.zeros((hid_c,), dtype=jnp.float32),
        "w2": xavier(k2, K, hid_c, out_c),
        "b2": jnp.zeros((out_c,), dtype=jnp.float32),
    }


if __name__ == "__main__":
    key = jax.random.PRNGKey(0)
    k_x, k_g, k_p = jax.random.split(key, 3)

    B, N, in_c, hid_c, out_c, K_cheb = 2, 16, 4, 32, 8, 1

    flow_x = jax.random.normal(k_x, (B, N, in_c), dtype=jnp.float32)

    # symmetric non-negative adjacency, no self loops, strictly positive degrees
    a = jax.random.uniform(k_g, (N, N), dtype=jnp.float32)
    graph = (a + a.T) * 0.5
    graph = graph * (1.0 - jnp.eye(N, dtype=jnp.float32))

    params = init_chebnet_params(k_p, in_c, hid_c, out_c, K=K_cheb)

    # exact f32-parity path (validation)
    fwd_f32 = make_chebnet_forward(params, graph, batch_size=B, use_bf16=False)
    out_f32 = jax.block_until_ready(fwd_f32(flow_x))

    # default performance path: bf16 MXU inputs, f32 accumulation
    fwd = make_chebnet_forward(params, graph, batch_size=B)
    out = jax.block_until_ready(fwd(flow_x))

    ref = chebnet_reference(params, flow_x, graph)

    assert out.shape == (B, N, out_c), out.shape
    assert out_f32.shape == (B, N, out_c), out_f32.shape
    err_f32 = float(jnp.max(jnp.abs(out_f32 - ref)))
    err_bf16 = float(jnp.max(jnp.abs(out - ref)))
    assert err_f32 < 2e-4, f"f32 path mismatch: {err_f32}"
    assert err_bf16 < 3e-2, f"bf16 path mismatch: {err_bf16}"
    print("KERNEL_OK")
</pallas_src>

<mosaic_0001>
module attributes {stable_mosaic.version = 11 : i64} {
  func.func @_chebnet_fused_kernel(%arg0: memref<16x32xf32, #tpu.memory_space<vmem>>, %arg1: memref<16x8xf32, #tpu.memory_space<vmem>>, %arg2: memref<16x128xf32, #tpu.memory_space<vmem>>, %arg3: memref<1x128xf32, #tpu.memory_space<vmem>>, %arg4: memref<256x128xf32, #tpu.memory_space<vmem>>, %arg5: memref<1x128xf32, #tpu.memory_space<vmem>>, %arg6: memref<16x128xf32, #tpu.memory_space<vmem>>) attributes {dimension_semantics = [], scalar_prefetch = 0 : i64, scratch_operands = 0 : i64, tpu.core_type = #tpu.core_type<tc>} {
    %c0 = arith.constant 0 : index
    %c0_0 = arith.constant 0 : index
    %0 = vector.load %arg0[%c0, %c0_0] : memref<16x32xf32, #tpu.memory_space<vmem>>, vector<16x32xf32>
    %c0_1 = arith.constant 0 : index
    %c0_2 = arith.constant 0 : index
    %1 = vector.load %arg1[%c0_1, %c0_2] : memref<16x8xf32, #tpu.memory_space<vmem>>, vector<16x8xf32>
    %c0_3 = arith.constant 0 : index
    %c0_4 = arith.constant 0 : index
    %2 = vector.load %arg2[%c0_3, %c0_4] : memref<16x128xf32, #tpu.memory_space<vmem>>, vector<8x128xf32>
    %cst = arith.constant dense<0.000000e+00> : vector<16x128xf32>
    %3 = tpu.matmul %1, %2, %cst {dimension_numbers = #tpu.dot_dimension_numbers<[1], [0], [0], [1], [0, 0, 1, 1], [], []>} : vector<16x8xf32>, vector<8x128xf32>, vector<16x128xf32> -> vector<16x128xf32>
    %c8 = arith.constant 8 : index
    %c0_5 = arith.constant 0 : index
    %4 = vector.load %arg2[%c8, %c0_5] : memref<16x128xf32, #tpu.memory_space<vmem>>, vector<8x128xf32>
    %cst_6 = arith.constant dense<0.000000e+00> : vector<16x128xf32>
    %5 = tpu.matmul %1, %4, %cst_6 {dimension_numbers = #tpu.dot_dimension_numbers<[1], [0], [0], [1], [0, 0, 1, 1], [], []>} : vector<16x8xf32>, vector<8x128xf32>, vector<16x128xf32> -> vector<16x128xf32>
    %6 = tpu.concatenate %3, %5 in 0 : vector<16x128xf32>, vector<16x128xf32> -> vector<32x128xf32>
    %cst_7 = arith.constant dense<0.000000e+00> : vector<16x128xf32>
    %7 = tpu.matmul %0, %6, %cst_7 {dimension_numbers = #tpu.dot_dimension_numbers<[1], [0], [0], [1], [0, 0, 1, 1], [], []>} : vector<16x32xf32>, vector<32x128xf32>, vector<16x128xf32> -> vector<16x128xf32>
    %c0_8 = arith.constant 0 : index
    %c0_9 = arith.constant 0 : index
    %8 = vector.load %arg3[%c0_8, %c0_9] : memref<1x128xf32, #tpu.memory_space<vmem>>, vector<1x128xf32>
    %9 = vector.broadcast %8 : vector<1x128xf32> to vector<16x128xf32>
    %10 = arith.addf %7, %9 : vector<16x128xf32>
    %cst_10 = arith.constant 0.000000e+00 : f32
    %11 = vector.broadcast %cst_10 : f32 to vector<16x128xf32>
    %12 = arith.maximumf %10, %11 : vector<16x128xf32>
    %c0_11 = arith.constant 0 : index
    %c0_12 = arith.constant 0 : index
    %13 = vector.load %arg4[%c0_11, %c0_12] : memref<256x128xf32, #tpu.memory_space<vmem>>, vector<128x128xf32>
    %cst_13 = arith.constant dense<0.000000e+00> : vector<16x128xf32>
    %14 = tpu.matmul %12, %13, %cst_13 {dimension_numbers = #tpu.dot_dimension_numbers<[1], [0], [0], [1], [0, 0, 1, 1], [], []>} : vector<16x128xf32>, vector<128x128xf32>, vector<16x128xf32> -> vector<16x128xf32>
    %c128 = arith.constant 128 : index
    %c0_14 = arith.constant 0 : index
    %15 = vector.load %arg4[%c128, %c0_14] : memref<256x128xf32, #tpu.memory_space<vmem>>, vector<128x128xf32>
    %cst_15 = arith.constant dense<0.000000e+00> : vector<16x128xf32>
    %16 = tpu.matmul %12, %15, %cst_15 {dimension_numbers = #tpu.dot_dimension_numbers<[1], [0], [0], [1], [0, 0, 1, 1], [], []>} : vector<16x128xf32>, vector<128x128xf32>, vector<16x128xf32> -> vector<16x128xf32>
    %17 = tpu.concatenate %14, %16 in 0 : vector<16x128xf32>, vector<16x128xf32> -> vector<32x128xf32>
    %cst_16 = arith.constant dense<0.000000e+00> : vector<16x128xf32>
    %18 = tpu.matmul %0, %17, %cst_16 {dimension_numbers = #tpu.dot_dimension_numbers<[1], [0], [0], [1], [0, 0, 1, 1], [], []>} : vector<16x32xf32>, vector<32x128xf32>, vector<16x128xf32> -> vector<16x128xf32>
    %c0_17 = arith.constant 0 : index
    %c0_18 = arith.constant 0 : index
    %19 = vector.load %arg5[%c0_17, %c0_18] : memref<1x128xf32, #tpu.memory_space<vmem>>, vector<1x128xf32>
    %20 = vector.broadcast %19 : vector<1x128xf32> to vector<16x128xf32>
    %21 = arith.addf %18, %20 : vector<16x128xf32>
    %cst_19 = arith.constant 0.000000e+00 : f32
    %22 = vector.broadcast %cst_19 : f32 to vector<16x128xf32>
    %23 = arith.maximumf %21, %22 : vector<16x128xf32>
    %c0_20 = arith.constant 0 : index
    %c0_21 = arith.constant 0 : index
    %24 = vector.load %arg6[%c0_20, %c0_21] : memref<16x128xf32, #tpu.memory_space<vmem>>, vector<16x128xf32>
    tpu.vector_store %arg6[%c0_20, %c0_21], %23 {strides = array<i32>} : memref<16x128xf32, #tpu.memory_space<vmem>>, vector<16x128xf32>,
    return
  }
}

</mosaic_0001>

<bundles_post_ra>
// kernel: forward.1
= control target key start
LH: loop header
LB: loop body
LE: loop exit
PB: predicated region body
PF: predicated region fallthrough
CT: control target
= control target key end

     0   :  { %11 = vsyncpa [#allocation3], 0  ;;  %s874_s0 = inlined_call_operand.hbm [shape: f32[16,32], index: 0, kind: input, shape index: {}]   ;;  %s875_s1 = inlined_call_operand.vmem [shape: f32[16,8], index: 1, kind: input, shape index: {}]   ;;  %s876_s2 = inlined_call_operand.vmem [shape: f32[16,128], index: 2, kind: input, shape index: {}]   ;;  %s877_s3 = inlined_call_operand.vmem [shape: f32[1,128], index: 3, kind: input, shape index: {}, may-alias: {3,5}]   ;;  %s878_s4 = inlined_call_operand.hbm [shape: f32[256,128], index: 4, kind: input, shape index: {}]   ;;  %s879_s5 = inlined_call_operand.vmem [shape: f32[1,128], index: 5, kind: input, shape index: {}, may-alias: {3,5}]   ;;  %s880_s6 = inlined_call_operand.vmem [shape: f32[16,128], index: 6, kind: output, shape index: {}]  }
   0x1   :  { %12 = vsyncpa [#allocation5], 0  ;;  %s793_s21 = smov [#allocation2]  }
   0x2   :  { %s18_s22 = sshll.u32 %s793_s21, 4  ;;  %s19_s22 = int_to_ptr.vmem [resolvable:$true] %s18_s22 }
   0x3   :  { %s757_s23 = scalar_lea.vmem %s19_s22, 256  ;;  %p762_p1 = scmp.lt.s32.totalorder %s19_s22, %s19_s22 }
   0x4   :  { %p758_p0 = scmp.ne.s32.totalorder %s19_s22, %s757_s23  ;;  %p763_p2 = scmp.lt.s32.totalorder %s757_s23, %s757_s23 }
   0x6   :  { %p764_p3 = por %p763_p2, %p762_p1 }
   0x8   :  { %p765_p4 = pnand %p764_p3, %p758_p0 }
   0xa   :  { %768 = shalt.err (!%p765_p4)
}
   0xb   :  { %s794_s24 = smov 128   ;;  %s795_s25 = smov 8  }
   0xc   :  { %24 = dma.hbm_to_vmem [thread:$0]  %s874_s0, 256, %s19_s22, [#allocation3], %s794_s24, %s794_s24, %s795_s25  }
   0xd   :  { %s796_s28 = smov [#allocation4]  }
   0xe   :  { %s36_s29 = sshll.u32 %s796_s28, 4  ;;  %s37_s29 = int_to_ptr.vmem [resolvable:$true] %s36_s29 }
   0xf   :  { %s777_s30 = scalar_lea.vmem %s37_s29, 4096  ;;  %p782_p6 = scmp.lt.s32.totalorder %s37_s29, %s37_s29 }
  0x10   :  { %p778_p5 = scmp.ne.s32.totalorder %s37_s29, %s777_s30  ;;  %p783_p7 = scmp.lt.s32.totalorder %s777_s30, %s777_s30 }
  0x12   :  { %p784_p8 = por %p783_p7, %p782_p6 }
  0x14   :  { %p785_p9 = pnand %p784_p8, %p778_p5 }
  0x16   :  { %788 = shalt.err (!%p785_p9)
}
  0x17   :  { %42 = dma.hbm_to_vmem [thread:$0]  %s878_s4, 4096, %s37_s29, [#allocation5], %s794_s24, %s794_s24, %s795_s25  }
  0x18   :  { %789 = dma.done.wait [#allocation3], 256  }
  0x19   :  { %790 = vsyncadd [#allocation3], 4294967040 }
  0x1a   :  { %791 = dma.done.wait [#allocation5], 4096  }
  0x1b   :  { %792 = vsyncadd [#allocation5], 4294963200  ;;  %vm56_vm0 = vcmask 64512   ;;  %v138_v0 = vld [vmem:[%s876_s2 + $0x8] sm:$0xff]  ;;  %v53_v1 = vld [vmem:[%s875_s1] sm:$0xff]  ;;  %vm221_vm1 = vcmask 261120  }
  0x1c   :  { %v55_v2 = vld [vmem:[%s876_s2] sm:$0xff]  ;;  %648 = vmatprep.subr.mxu1 %v138_v0  ;;  %650 = vmatprep.mubr.msk.f32.mxu1 %vm56_vm0, %v53_v1  ;;  %v54_v3 = vld [vmem:[%s875_s1 + $0x8] sm:$0xff]  ;;  %v318_v7 = vld [vmem:[#allocation4 + $0x68] sm:$0xff] }
  0x1d   :  { %649 = vmatpush3.msra.mxu1 %v138_v0  ;;  %643 = vmatprep.subr.mxu0 %v55_v2  ;;  %v850_v4 = vld [vmem:[#allocation2] sm:$0xff]  ;;  %v320_v5 = vld [vmem:[#allocation4 + $0x78] sm:$0xff]  ;;  %v317_v8 = vld [vmem:[#allocation4 + $0x60] sm:$0xff] }
  0x1e   :  { %651 = vmatmul.mubr.msk.f32.vlgmr.msra.gmra.mxu1 %vm56_vm0, %v54_v3  ;;  %644 = vmatpush3.msra.mxu0 %v55_v2  ;;  %v319_v6 = vld [vmem:[#allocation4 + $0x70] sm:$0xff]  ;;  %v316_v9 = vld [vmem:[#allocation4 + $0x58] sm:$0xff]  ;;  %v314_v11 = vld [vmem:[#allocation4 + $0x48] sm:$0xff] }
  0x1f   :  { %645 = vmatprep.mubr.msk.f32.mxu0 %vm56_vm0, %v53_v1  ;;  %664 = vmatprep.subr.mxu1 %v320_v5  ;;  %v315_v10 = vld [vmem:[#allocation4 + $0x50] sm:$0xff]  ;;  %v313_v12 = vld [vmem:[#allocation4 + $0x40] sm:$0xff]  ;;  %v312_v13 = vld [vmem:[#allocation4 + $0x38] sm:$0xff] }
  0x20   :  { %646 = vmatmul.mubr.msk.f32.vlgmr.msra.gmra.mxu0 %vm56_vm0, %v54_v3  ;;  %665 = vmatpush3.msra.mxu1 %v320_v5  ;;  %v311_v14 = vld [vmem:[#allocation4 + $0x30] sm:$0xff]  ;;  %v310_v15 = vld [vmem:[#allocation4 + $0x28] sm:$0xff]  ;;  %v309_v16 = vld [vmem:[#allocation4 + $0x20] sm:$0xff] }
  0x21   :  { %661 = vmatprep.mubr.msk.f32.mxu0 %vm221_vm1, %v850_v4  ;;  %666 = vmatprep.subr.mxu1 %v319_v6  ;;  %v854_v21 = vld [vmem:[#allocation2 + $0x8] sm:$0xff]  ;;  %v410_v23 = vld [vmem:[#allocation4 + $0xf0] sm:$0xff]  ;;  %v409_v24 = vld [vmem:[#allocation4 + $0xe8] sm:$0xff] }
  0x22   :  { %667 = vmatpush3.msra.mxu1 %v319_v6  ;;  %v411_v22 = vld [vmem:[#allocation4 + $0xf8] sm:$0xff]  ;;  %v408_v25 = vld [vmem:[#allocation4 + $0xe0] sm:$0xff]  ;;  %v406_v27 = vld [vmem:[#allocation4 + $0xd0] sm:$0xff] }
  0x23   :  { %668 = vmatprep.subr.mxu1 %v318_v7  ;;  %v407_v26 = vld [vmem:[#allocation4 + $0xd8] sm:$0xff]  ;;  %v405_v28 = vld [vmem:[#allocation4 + $0xc8] sm:$0xff]  ;;  %v404_v29 = vld [vmem:[#allocation4 + $0xc0] sm:$0xff] }
  0x24   :  { %669 = vmatpush3.msra.mxu1 %v318_v7  ;;  %v403_v30 = vld [vmem:[#allocation4 + $0xb8] sm:$0xff]  ;;  %v402_v31 = vld [vmem:[#allocation4 + $0xb0] sm:$0xff]  ;;  %v401_v32 = vld [vmem:[#allocation4 + $0xa8] sm:$0xff] }
  0x25   :  { %670 = vmatprep.subr.mxu1 %v317_v8  ;;  %v400_v33 = vld [vmem:[#allocation4 + $0xa0] sm:$0xff]  ;;  %v308_v34 = vld [vmem:[#allocation4 + $0x18] sm:$0xff]  ;;  %v307_v36 = vld [vmem:[#allocation4 + $0x10] sm:$0xff] }
  0x26   :  { %671 = vmatpush3.msra.mxu1 %v317_v8  ;;  %v399_v35 = vld [vmem:[#allocation4 + $0x98] sm:$0xff]  ;;  %v398_v37 = vld [vmem:[#allocation4 + $0x90] sm:$0xff]  ;;  %v306_v38 = vld [vmem:[#allocation4 + $0x8] sm:$0xff] }
  0x27   :  { %672 = vmatprep.subr.mxu1 %v316_v9  ;;  %v397_v39 = vld [vmem:[#allocation4 + $0x88] sm:$0xff]  ;;  %v305_v40 = vld [vmem:[#allocation4] sm:$0xff]  ;;  %v583_v42 = vld [vmem:[%s877_s3] ss:$0 sm:$0xff] }
  0x28   :  { %673 = vmatpush3.msra.mxu1 %v316_v9  ;;  %v396_v41 = vld [vmem:[#allocation4 + $0x80] sm:$0xff]  ;;  %v586_v53 = vld [vmem:[%s879_s5] ss:$0 sm:$0xff] }
  0x29   :  { %674 = vmatprep.subr.mxu1 %v315_v10 }
  0x2a   :  { %675 = vmatpush3.msra.mxu1 %v315_v10 }
  0x2b   :  { %676 = vmatprep.subr.mxu1 %v314_v11 }
  0x2c   :  { %677 = vmatpush3.msra.mxu1 %v314_v11 }
  0x2d   :  { %678 = vmatprep.subr.mxu1 %v313_v12 }
  0x2e   :  { %679 = vmatpush3.msra.mxu1 %v313_v12 }
  0x2f   :  { %680 = vmatprep.subr.mxu1 %v312_v13 }
  0x30   :  { %681 = vmatpush3.msra.mxu1 %v312_v13 }
  0x31   :  { %682 = vmatprep.subr.mxu1 %v311_v14 }
  0x32   :  { %683 = vmatpush3.msra.mxu1 %v311_v14 }
  0x33   :  { %684 = vmatprep.subr.mxu1 %v310_v15 }
  0x34   :  { %685 = vmatpush3.msra.mxu1 %v310_v15 }
  0x35   :  { %686 = vmatprep.subr.mxu1 %v309_v16 }
  0x36   :  { %687 = vmatpush3.msra.mxu1 %v309_v16 }
  0x37   :  { %688 = vmatprep.subr.mxu1 %v308_v34 }
  0x38   :  { %689 = vmatpush3.msra.mxu1 %v308_v34 }
  0x39   :  { %690 = vmatprep.subr.mxu1 %v307_v36 }
  0x3a   :  { %691 = vmatpush3.msra.mxu1 %v307_v36 }
  0x3b   :  { %692 = vmatprep.subr.mxu1 %v306_v38 }
  0x3c   :  { %693 = vmatpush3.msra.mxu1 %v306_v38 }
  0x3d   :  { %694 = vmatprep.subr.mxu1 %v305_v40 }
  0x3e   :  { %695 = vmatpush3.msra.mxu1 %v305_v40 }
  0xde   :  { %v652_v17 = vpop.f32.mrf.mxu1 }
  0xdf   :  { %653 = vmatprep.subr.mxu0 %v652_v17 }
  0xe0   :  { %v647_v18 = vpop.f32.mrf.mxu0  ;;  %v205_v19 = vpop.f32.mrf.mxu1  ;;  %654 = vmatpush3.msra.mxu0 %v652_v17 }
  0xe1   :  { %655 = vmatprep.subr.mxu0 %v205_v19 }
  0xe2   :  { %656 = vmatpush3.msra.mxu0 %v205_v19  ;;  %v129_v20 = vpop.f32.mrf.mxu0 }
  0xe3   :  { %657 = vmatprep.subr.mxu0 %v647_v18 }
  0xe4   :  { %658 = vmatpush3.msra.mxu0 %v647_v18 }
  0xe5   :  { %659 = vmatprep.subr.mxu0 %v129_v20 }
  0xe6   :  { %660 = vmatpush3.msra.mxu0 %v129_v20 }
  0xe7   :  { %662 = vmatmul.mubr.msk.f32.vlgmr.msra.gmra.mxu0 %vm221_vm1, %v854_v21  ;;  %699 = vmatprep.subr.mxu0 %v411_v22 }
  0xe8   :  { %700 = vmatpush3.msra.mxu0 %v411_v22 }
  0xe9   :  { %701 = vmatprep.subr.mxu0 %v410_v23 }
  0xea   :  { %702 = vmatpush3.msra.mxu0 %v410_v23 }
  0xeb   :  { %703 = vmatprep.subr.mxu0 %v409_v24 }
  0xec   :  { %704 = vmatpush3.msra.mxu0 %v409_v24 }
  0xed   :  { %705 = vmatprep.subr.mxu0 %v408_v25 }
  0xee   :  { %706 = vmatpush3.msra.mxu0 %v408_v25 }
  0xef   :  { %707 = vmatprep.subr.mxu0 %v407_v26 }
  0xf0   :  { %708 = vmatpush3.msra.mxu0 %v407_v26 }
  0xf1   :  { %709 = vmatprep.subr.mxu0 %v406_v27 }
  0xf2   :  { %710 = vmatpush3.msra.mxu0 %v406_v27 }
  0xf3   :  { %711 = vmatprep.subr.mxu0 %v405_v28 }
  0xf4   :  { %712 = vmatpush3.msra.mxu0 %v405_v28 }
  0xf5   :  { %713 = vmatprep.subr.mxu0 %v404_v29 }
  0xf6   :  { %714 = vmatpush3.msra.mxu0 %v404_v29 }
  0xf7   :  { %715 = vmatprep.subr.mxu0 %v403_v30 }
  0xf8   :  { %716 = vmatpush3.msra.mxu0 %v403_v30 }
  0xf9   :  { %717 = vmatprep.subr.mxu0 %v402_v31 }
  0xfa   :  { %718 = vmatpush3.msra.mxu0 %v402_v31 }
  0xfb   :  { %719 = vmatprep.subr.mxu0 %v401_v32 }
  0xfc   :  { %720 = vmatpush3.msra.mxu0 %v401_v32 }
  0xfd   :  { %721 = vmatprep.subr.mxu0 %v400_v33 }
  0xfe   :  { %722 = vmatpush3.msra.mxu0 %v400_v33 }
  0xff   :  { %723 = vmatprep.subr.mxu0 %v399_v35 }
 0x100   :  { %724 = vmatpush3.msra.mxu0 %v399_v35 }
 0x101   :  { %725 = vmatprep.subr.mxu0 %v398_v37 }
 0x102   :  { %726 = vmatpush3.msra.mxu0 %v398_v37 }
 0x103   :  { %727 = vmatprep.subr.mxu0 %v397_v39 }
 0x104   :  { %728 = vmatpush3.msra.mxu0 %v397_v39 }
 0x105   :  { %729 = vmatprep.subr.mxu0 %v396_v41 }
 0x106   :  { %730 = vmatpush3.msra.mxu0 %v396_v41 }
 0x1a7   :  { %v663_v43 = vpop.f32.mrf.mxu0 }
 0x1a8   :  { %v300_v44 = vadd.f32 %v663_v43, %v583_v42 }
 0x1a9   :  { %v294_v45 = vpop.f32.mrf.mxu0 }
 0x1aa   :  { %v295_v46 = vadd.f32 %v583_v42, %v294_v45  ;;  %v304_v48 = vmax.f32 %v300_v44, 0.0 }
 0x1ac   :  { %v303_v47 = vmax.f32 %v295_v46, 0.0 }
 0x1ae   :  { %696 = vmatprep.mubr.f32.mxu1 %v303_v47  ;;  %731 = vmatprep.mubr.f32.mxu0 %v303_v47 }
 0x1af   :  { %697 = vmatmul.mubr.f32.vlgmr.msra.gmra.mxu1 %v304_v48  ;;  %732 = vmatmul.mubr.f32.vlgmr.msra.gmra.mxu0 %v304_v48 }
 0x1b0   :  { %742 = vmatprep.mubr.msk.f32.mxu1 %vm221_vm1, %v850_v4 }
 0x26f   :  { %v733_v49 = vpop.f32.mrf.mxu0  ;;  %v698_v50 = vpop.f32.mrf.mxu1 }
 0x270   :  { %734 = vmatprep.subr.mxu1 %v733_v49 }
 0x271   :  { %v478_v51 = vpop.f32.mrf.mxu0  ;;  %735 = vmatpush3.msra.mxu1 %v733_v49  ;;  %v387_v52 = vpop.f32.mrf.mxu1 }
 0x272   :  { %736 = vmatprep.subr.mxu1 %v478_v51 }
 0x273   :  { %737 = vmatpush3.msra.mxu1 %v478_v51 }
 0x274   :  { %738 = vmatprep.subr.mxu1 %v698_v50 }
 0x275   :  { %739 = vmatpush3.msra.mxu1 %v698_v50 }
 0x276   :  { %740 = vmatprep.subr.mxu1 %v387_v52 }
 0x277   :  { %741 = vmatpush3.msra.mxu1 %v387_v52 }
 0x278   :  { %743 = vmatmul.mubr.msk.f32.vlgmr.msra.gmra.mxu1 %vm221_vm1, %v854_v21 }
 0x338   :  { %v744_v54 = vpop.f32.mrf.mxu1 }
 0x339   :  { %v566_v55 = vadd.f32 %v744_v54, %v586_v53 }
 0x33a   :  { %v560_v56 = vpop.f32.mrf.mxu1 }
 0x33b   :  { %v570_v57 = vmax.f32 %v566_v55, 0.0  ;;  %v561_v58 = vadd.f32 %v586_v53, %v560_v56 }
 0x33d   :  { %572 = vst [vmem:[%s880_s6 + $0x8] sm:$0xff] %v570_v57  ;;  %v569_v59 = vmax.f32 %v561_v58, 0.0 }
 0x33f   :  { %571 = vst [vmem:[%s880_s6] sm:$0xff] %v569_v59 }
 0x340   :  { %577 = vsyncpa [#allocation3], 1 }
 0x341   :  { %578 = vsyncpa [#allocation5], 1 }

</bundles_post_ra>
